<compile_context>
chip_gen: v5e
topology: v5e:2x2
jax: 0.10.0
libtpu: 0.0.40
codegen_flags: <defaults>
</compile_context>

<pallas_src>
import functools

import jax
import jax.numpy as jnp
from jax.experimental import pallas as pl
from jax.experimental.pallas import tpu as pltpu

_EPS = 1e-5
_TARGET_BLOCK_BYTES = 6 * 1024 * 1024   # ~6 MiB per pipeline buffer
_VMEM_LIMIT_BYTES = 56 * 1024 * 1024    # > v5e 16 MiB scoped default, < v7x 64 MiB


def _ln2d_kernel(x_ref, o_ref, *, eps):
    # x_ref / o_ref: (TN, D) VMEM tile — one sample per sublane row, its full
    # C*H*W feature vector along the lane axis. Normalization is per-row, so
    # garbage rows from a partial last grid block cannot contaminate valid
    # rows; their outputs are masked away by the pipeline on write-back.
    #
    # Statistics accumulate in f32 regardless of input dtype.
    # NOTE: for bf16 inputs on v6e/v7x the normalize path could stay in bf16
    # to halve VALU/vld work; the kernel is HBM-bound at these block sizes so
    # the simpler/safer f32 path is kept.
    x = x_ref[...].astype(jnp.float32)
    inv_d = jnp.float32(1.0 / x.shape[-1])

    # Two-sweep variance (VMEM-resident, no extra HBM traffic): mean first,
    # then centered sum-of-squares — avoids E[x^2] - mean^2 cancellation.
    mean = jnp.sum(x, axis=-1, keepdims=True) * inv_d
    xc = x - mean
    var = jnp.sum(xc * xc, axis=-1, keepdims=True) * inv_d
    inv_std = jax.lax.rsqrt(var + eps)

    o_ref[...] = (xc * inv_std).astype(o_ref.dtype)


def ln2d(x, *, eps=_EPS, block_rows=None):
    """LayerNorm over (C, H, W) per sample for an NCHW input."""
    n, c, h, w = x.shape
    d = c * h * w
    itemsize = jnp.dtype(x.dtype).itemsize
    row_bytes = d * itemsize

    # Samples per block: biggest count whose input buffer is ~6 MiB. If the
    # block spans all of N it may be any size (full-dim exemption); otherwise
    # the sublane dim must be a multiple of 8.
    if block_rows is None:
        tn = _TARGET_BLOCK_BYTES // max(row_bytes, 1)
    else:
        tn = block_rows
    if tn >= n:
        tn = n
    else:
        tn = max(8, (tn // 8) * 8)
    # TODO(synk): if a single sample (or the minimum 8-sample block) exceeds
    #             the VMEM budget, a D-chunked two-pass variant (partial sums
    #             in VMEM scratch over an inner "arbitrary" axis, then a
    #             normalize sweep) is needed; not required at these shapes.

    x2 = x.reshape(n, d)  # free: contiguous NCHW view, no HBM copy
    grid = (pl.cdiv(n, tn),)

    kernel = functools.partial(_ln2d_kernel, eps=eps)

    out2 = pl.pallas_call(
        kernel,
        out_shape=jax.ShapeDtypeStruct((n, d), x.dtype),
        grid_spec=pltpu.PrefetchScalarGridSpec(
            num_scalar_prefetch=0,
            grid=grid,
            in_specs=[pl.BlockSpec((tn, d), lambda i: (i, 0))],
            out_specs=pl.BlockSpec((tn, d), lambda i: (i, 0)),
        ),
        compiler_params=pltpu.CompilerParams(
            dimension_semantics=("parallel",),
            vmem_limit_bytes=_VMEM_LIMIT_BYTES,
        ),
        cost_estimate=pl.CostEstimate(
            flops=7 * n * d,
            transcendentals=n,
            bytes_accessed=2 * n * d * itemsize,
        ),
    )(x2)

    return out2.reshape(n, c, h, w)


def ln2d_reference(x):
    """Pure-JAX reference for correctness checking."""
    n = x.shape[0]
    xf = x.reshape(n, -1).astype(jnp.float32)
    mean = jnp.mean(xf, axis=-1, keepdims=True)
    var = jnp.mean((xf - mean) ** 2, axis=-1, keepdims=True)
    y = (xf - mean) / jnp.sqrt(var + _EPS)
    return y.reshape(x.shape).astype(x.dtype)


if __name__ == "__main__":
    # Main case (module-consistent small shape).
    x = jax.random.normal(jax.random.PRNGKey(0), (2, 4, 16, 16), dtype=jnp.float32)
    out = jax.block_until_ready(ln2d(x))
    ref = ln2d_reference(x)
    assert out.shape == x.shape
    assert jnp.allclose(out, ref, atol=1e-5, rtol=1e-5), "mismatch vs reference (main)"

    # Ragged feature dim (D % 128 != 0) with a nonzero mean: exercises the
    # full-D block path and the two-sweep variance numerics.
    xr = jax.random.normal(jax.random.PRNGKey(1), (3, 3, 7, 5), dtype=jnp.float32) + 3.0
    outr = jax.block_until_ready(ln2d(xr))
    assert jnp.allclose(outr, ln2d_reference(xr), atol=1e-5, rtol=1e-5), \
        "mismatch vs reference (ragged D)"

    # Forced small block: exercises multi-step grid + partial last block
    # (OOB rows discarded by the pipeline).
    xp = jax.random.normal(jax.random.PRNGKey(2), (12, 4, 16, 16), dtype=jnp.float32)
    outp = jax.block_until_ready(ln2d(xp, block_rows=8))
    assert jnp.allclose(outp, ln2d_reference(xp), atol=1e-5, rtol=1e-5), \
        "mismatch vs reference (partial block)"

    print("KERNEL_OK")
</pallas_src>

<mosaic_0001>
module attributes {stable_mosaic.version = 11 : i64} {
  func.func @_ln2d_kernel(%arg0: i32, %arg1: memref<2x1024xf32, #tpu.memory_space<vmem>>, %arg2: memref<2x1024xf32, #tpu.memory_space<vmem>>) attributes {dimension_semantics = [#tpu.dimension_semantics<parallel>], iteration_bounds = array<i64: 1>, scalar_prefetch = 0 : i64, scratch_operands = 0 : i64, tpu.core_type = #tpu.core_type<tc>, window_params = [{transform_indices = @transform_0, window_bounds = array<i64: 2, 1024>}, {transform_indices = @transform_1, window_bounds = array<i64: 2, 1024>}]} {
    %c0 = arith.constant 0 : index
    %c0_0 = arith.constant 0 : index
    %0 = vector.load %arg1[%c0, %c0_0] : memref<2x1024xf32, #tpu.memory_space<vmem>>, vector<2x1024xf32>
    %cst = arith.constant dense<0.000000e+00> : vector<2xf32>
    %1 = vector.multi_reduction <add>, %0, %cst [1] : vector<2x1024xf32> to vector<2xf32>
    %2 = vector.shape_cast %1 : vector<2xf32> to vector<2x1xf32>
    %cst_1 = arith.constant 9.765625E-4 : f32
    %3 = vector.broadcast %cst_1 : f32 to vector<2x1xf32>
    %4 = arith.mulf %2, %3 : vector<2x1xf32>
    %5 = vector.broadcast %4 : vector<2x1xf32> to vector<2x1024xf32>
    %6 = arith.subf %0, %5 : vector<2x1024xf32>
    %7 = arith.mulf %6, %6 : vector<2x1024xf32>
    %cst_2 = arith.constant dense<0.000000e+00> : vector<2xf32>
    %8 = vector.multi_reduction <add>, %7, %cst_2 [1] : vector<2x1024xf32> to vector<2xf32>
    %9 = vector.shape_cast %8 : vector<2xf32> to vector<2x1xf32>
    %cst_3 = arith.constant 9.765625E-4 : f32
    %10 = vector.broadcast %cst_3 : f32 to vector<2x1xf32>
    %11 = arith.mulf %9, %10 : vector<2x1xf32>
    %cst_4 = arith.constant 9.99999974E-6 : f32
    %12 = vector.broadcast %cst_4 : f32 to vector<2x1xf32>
    %13 = arith.addf %11, %12 : vector<2x1xf32>
    %14 = math.rsqrt %13 : vector<2x1xf32>
    %15 = vector.broadcast %14 : vector<2x1xf32> to vector<2x1024xf32>
    %16 = arith.mulf %6, %15 : vector<2x1024xf32>
    %c0_5 = arith.constant 0 : index
    %c0_6 = arith.constant 0 : index
    %17 = vector.load %arg2[%c0_5, %c0_6] : memref<2x1024xf32, #tpu.memory_space<vmem>>, vector<2x1024xf32>
    tpu.vector_store %arg2[%c0_5, %c0_6], %16 {strides = array<i32>} : memref<2x1024xf32, #tpu.memory_space<vmem>>, vector<2x1024xf32>,
    return
  }
  func.func @transform_0(%arg0: i32) -> (i32, i32) {
    %c0_i32 = arith.constant 0 : i32
    %c0_i32_0 = arith.constant 0 : i32
    return %arg0, %c0_i32 : i32, i32
  }
  func.func @transform_1(%arg0: i32) -> (i32, i32) {
    %c0_i32 = arith.constant 0 : i32
    %c0_i32_0 = arith.constant 0 : i32
    return %arg0, %c0_i32 : i32, i32
  }
}

</mosaic_0001>

<bundles_post_ra>
// kernel: tpu_custom_call.1
= control target key start
LH: loop header
LB: loop body
LE: loop exit
PB: predicated region body
PF: predicated region fallthrough
CT: control target
= control target key end

     0   :  { %6 = vsyncpa [#allocation3], 0  ;;  %s244_s0 = inlined_call_operand.hbm [shape: f32[2,1024], index: 0, kind: input, shape index: {}]   ;;  %s245_s1 = inlined_call_operand.hbm [shape: f32[2,1024], index: 1, kind: output, shape index: {}]  }
   0x1   :  { %7 = vsyncpa [#allocation4], 0  ;;  %s13_s8 = sshll.u32 %s244_s0, 4  ;;  %s209_s9 = smov [#allocation2]   ;;  %s14_s8 = int_to_ptr.hbm [resolvable:$true] %s13_s8 }
   0x2   :  { %s15_s10 = sshll.u32 %s209_s9, 4  ;;  %s16_s10 = int_to_ptr.vmem [resolvable:$true] %s15_s10 }
   0x3   :  { %18 = dma.hbm_to_vmem [thread:$0]  %s14_s8, 256, %s16_s10, [#allocation3]  }
   0x4   :  { %205 = dma.done.wait [#allocation3], 256  }
   0x5   :  { %206 = vsyncadd [#allocation3], 4294967040  ;;  %v23_v0 = vld [vmem:[#allocation2] sm:$0xff]  ;;  %v24_v1 = vld [vmem:[#allocation2 + $0x8] sm:$0xff]  ;;  %vm46_vm0 = vcmask 1041408   ;;  %s211_s0 = smov [#allocation5]  }
   0x6   :  { %27 = vst [vmem:[#allocation1] ss:$4 sm:$0xff] %v23_v0  ;;  %v210_v25 = vmov 269488144   ;;  %s140_s11 = sshll.u32 %s211_s0, 4  ;;  %s142_s14 = sshll.u32 %s245_s1, 4  ;;  %s141_s11 = int_to_ptr.vmem [resolvable:$true] %s140_s11  ;;  %s143_s14 = int_to_ptr.hbm [resolvable:$true] %s142_s14 }
   0x7   :  { %29 = vst [vmem:[#allocation1 + $0x20] ss:$4 sm:$0xff] %v24_v1  ;;  %v67_v26 = vunpack.c.l.s4 %v210_v25 }
   0x9   :  { %v68_v27 = vunpack.c.0.s8 %v67_v26 }
   0xd   :  { %v30_v2 = vld.sshfl [vmem:[#allocation1] sm:$0xff pattern:$0x73625140]  ;;  %v31_v3 = vld.sshfl [vmem:[#allocation1 + $0x8] sm:$0xff pattern:$0x73625140] }
   0xe   :  { %v32_v4 = vld.sshfl [vmem:[#allocation1 + $0x10] sm:$0xff pattern:$0x73625140]  ;;  %v33_v5 = vld.sshfl [vmem:[#allocation1 + $0x18] sm:$0xff pattern:$0x73625140] }
   0xf   :  { %v47_v6 = vsel %vm46_vm0, %v30_v2, 0.0  ;;  %v48_v7 = vsel %vm46_vm0, %v31_v3, 0.0  ;;  %v50_v8 = vsel %vm46_vm0, %v32_v4, 0.0  ;;  %v34_v9 = vld.sshfl [vmem:[#allocation1 + $0x20] sm:$0xff pattern:$0x73625140] }
  0x10   :  { %v49_v10 = vadd.f32 %v48_v7, %v47_v6  ;;  %v52_v11 = vsel %vm46_vm0, %v33_v5, 0.0  ;;  %v35_v12 = vld.sshfl [vmem:[#allocation1 + $0x28] sm:$0xff pattern:$0x73625140]  ;;  %v54_v14 = vsel %vm46_vm0, %v34_v9, 0.0 }
  0x11   :  { %v36_v15 = vld.sshfl [vmem:[#allocation1 + $0x30] sm:$0xff pattern:$0x73625140]  ;;  %v56_v17 = vsel %vm46_vm0, %v35_v12, 0.0 }
  0x12   :  { %v51_v13 = vadd.f32 %v50_v8, %v49_v10  ;;  %v37_v18 = vld.sshfl [vmem:[#allocation1 + $0x38] sm:$0xff pattern:$0x73625140]  ;;  %v58_v20 = vsel %vm46_vm0, %v36_v15, 0.0 }
  0x13   :  { %v60_v22 = vsel %vm46_vm0, %v37_v18, 0.0 }
  0x14   :  { %v53_v16 = vadd.f32 %v52_v11, %v51_v13 }
  0x16   :  { %v55_v19 = vadd.f32 %v54_v14, %v53_v16 }
  0x18   :  { %v57_v21 = vadd.f32 %v56_v17, %v55_v19 }
  0x1a   :  { %v59_v23 = vadd.f32 %v58_v20, %v57_v21 }
  0x1c   :  { %v61_v24 = vadd.f32 %v60_v22, %v59_v23 }
  0x1e   :  { %62 = vadd.xlane.f32.xlu0 %v61_v24 }
  0x91   :  { %v63_v28 = vpop.xlane.xlu0 %62 }
  0x92   :  { %v64_v29 = vmul.f32 0.0009765625, %v63_v28 }
  0x94   :  { %v69_v30 = vperm.slane %v64_v29, %v68_v27 }
  0x96   :  { %v71_v31 = vsub.f32 %v23_v0, %v69_v30  ;;  %v72_v32 = vsub.f32 %v24_v1, %v69_v30 }
  0x98   :  { %v73_v33 = vmul.f32 %v71_v31, %v71_v31  ;;  %v74_v34 = vmul.f32 %v72_v32, %v72_v32 }
  0x9a   :  { %77 = vst [vmem:[#allocation1] ss:$4 sm:$0xff] %v73_v33 }
  0x9b   :  { %79 = vst [vmem:[#allocation1 + $0x20] ss:$4 sm:$0xff] %v74_v34 }
  0xa1   :  { %v80_v35 = vld.sshfl [vmem:[#allocation1] sm:$0xff pattern:$0x73625140]  ;;  %v81_v36 = vld.sshfl [vmem:[#allocation1 + $0x8] sm:$0xff pattern:$0x73625140] }
  0xa2   :  { %v82_v37 = vld.sshfl [vmem:[#allocation1 + $0x10] sm:$0xff pattern:$0x73625140]  ;;  %v96_v38 = vsel %vm46_vm0, %v80_v35, 0.0  ;;  %v97_v39 = vsel %vm46_vm0, %v81_v36, 0.0 }
  0xa3   :  { %v83_v40 = vld.sshfl [vmem:[#allocation1 + $0x18] sm:$0xff pattern:$0x73625140]  ;;  %v98_v41 = vadd.f32 %v97_v39, %v96_v38  ;;  %v99_v42 = vsel %vm46_vm0, %v82_v37, 0.0 }
  0xa4   :  { %v84_v43 = vld.sshfl [vmem:[#allocation1 + $0x20] sm:$0xff pattern:$0x73625140]  ;;  %v101_v45 = vsel %vm46_vm0, %v83_v40, 0.0 }
  0xa5   :  { %v100_v44 = vadd.f32 %v99_v42, %v98_v41  ;;  %v85_v46 = vld.sshfl [vmem:[#allocation1 + $0x28] sm:$0xff pattern:$0x73625140]  ;;  %v103_v48 = vsel %vm46_vm0, %v84_v43, 0.0 }
  0xa6   :  { %v86_v49 = vld.sshfl [vmem:[#allocation1 + $0x30] sm:$0xff pattern:$0x73625140]  ;;  %v105_v51 = vsel %vm46_vm0, %v85_v46, 0.0 }
  0xa7   :  { %v102_v47 = vadd.f32 %v101_v45, %v100_v44  ;;  %v87_v52 = vld.sshfl [vmem:[#allocation1 + $0x38] sm:$0xff pattern:$0x73625140]  ;;  %v107_v54 = vsel %vm46_vm0, %v86_v49, 0.0 }
  0xa8   :  { %v109_v56 = vsel %vm46_vm0, %v87_v52, 0.0 }
  0xa9   :  { %v104_v50 = vadd.f32 %v103_v48, %v102_v47 }
  0xab   :  { %v106_v53 = vadd.f32 %v105_v51, %v104_v50 }
  0xad   :  { %v108_v55 = vadd.f32 %v107_v54, %v106_v53 }
  0xaf   :  { %v110_v57 = vadd.f32 %v109_v56, %v108_v55 }
  0xb1   :  { %111 = vadd.xlane.f32.xlu0 %v110_v57 }
 0x124   :  { %v112_v58 = vpop.xlane.xlu0 %111 }
 0x125   :  { %v113_v59 = vmul.f32 0.0009765625, %v112_v58 }
 0x127   :  { %v114_v60 = vadd.f32 1e-05, %v113_v59 }
 0x129   :  { %155 = vrsqrt.f32 %v114_v60  ;;  %vm121_vm2 = vweird.f32 %v114_v60 }
 0x12f   :  { %v156_v61 = vpop.eup %155 }
 0x130   :  { %v116_v62 = vmul.f32 %v156_v61, %v114_v60  ;;  %vm122_vm1 = vweird.f32 %v156_v61 }
 0x131   :  { %vm123_vm3 = vmor %vm121_vm2, %vm122_vm1 }
 0x132   :  { %v117_v63 = vmul.f32 %v156_v61, %v116_v62 }
 0x134   :  { %v118_v0 = vmul.f32 0.5, %v117_v63 }
 0x136   :  { %v119_v1 = vsub.f32 1.5, %v118_v0 }
 0x138   :  { %v120_v2 = vmul.f32 %v156_v61, %v119_v1 }
 0x13a   :  { %v124_v3 = vsel %vm123_vm3, %v156_v61, %v120_v2 }
 0x13b   :  { %v129_v4 = vperm.slane %v124_v3, %v68_v27 }
 0x13d   :  { %v131_v5 = vmul.f32 %v129_v4, %v71_v31  ;;  %v132_v6 = vmul.f32 %v129_v4, %v72_v32 }
 0x13f   :  { %133 = vst [vmem:[#allocation5] sm:$0xff] %v131_v5 }
 0x140   :  { %134 = vst [vmem:[#allocation5 + $0x8] sm:$0xff] %v132_v6 }
 0x141   :  { %145 = dma.vmem_to_hbm [thread:$0]  %s141_s11, 256, %s143_s14, [#allocation4]  }
 0x142   :  { %207 = dma.done.wait [#allocation4], 256  }
 0x143   :  { %208 = vsyncadd [#allocation4], 4294967040 }
 0x144   :  { %150 = vsyncpa [#allocation3], 1 }
 0x145   :  { %151 = vsyncpa [#allocation4], 1 }

</bundles_post_ra>
